<compile_context>
chip_gen: v5e
topology: v5e:2x2
jax: 0.10.0
libtpu: 0.0.40
codegen_flags: <defaults>
</compile_context>

<pallas_src>
import jax
import jax.numpy as jnp
from jax.experimental import pallas as pl
from jax.experimental.pallas import tpu as pltpu

IN_FEATURES = 256
OUT_FEATURES = 256


def dense_relu_kernel(x_ref, w_ref, b_ref, o_ref):
    # x_ref: (TM, K) f32, w_ref: (K, N) f32 (VMEM-resident), b_ref: (1, N) f32.
    # Cast to bf16 in-kernel (free under the DMA shadow) and accumulate in f32
    # on the MXU; bias-add + ReLU in f32, then cast to the output dtype.
    x_bf = x_ref[...].astype(jnp.bfloat16)
    w_bf = w_ref[...].astype(jnp.bfloat16)
    acc = jnp.dot(x_bf, w_bf, preferred_element_type=jnp.float32)
    acc = acc + b_ref[...]                       # broadcast bias over rows
    o_ref[...] = jnp.maximum(acc, 0.0).astype(o_ref.dtype)


def dense_relu(x, w, b, *, tm=1024, out_dtype=None):
    """y = relu(x @ w + b).

    x: (M, 256) f32, w: (256, 256) f32, b: (1, 256) f32.
    out_dtype: output dtype (defaults to x.dtype); pass jnp.bfloat16 to cut
    HBM writeback traffic ~2x if the consumer accepts it.
    """
    M, K = x.shape
    Kw, N = w.shape
    assert K == Kw and b.shape == (1, N)
    out_dtype = x.dtype if out_dtype is None else out_dtype

    # Row-tile selection:
    #   * as big as practical (default 1024) to amortize per-step overhead,
    #   * capped at round_up(cdiv(M, 2), 16) so the parallel grid keeps >= 2
    #     steps whenever M allows (2 TensorCores on v7x),
    #   * multiple of 16 so bf16 intermediates / bf16 outputs stay on the
    #     native (16, 128) tile.
    tm_cap = ((pl.cdiv(M, 2) + 15) // 16) * 16
    tm_eff = max(16, min(tm, tm_cap))
    grid_m = pl.cdiv(M, tm_eff)                  # partial last block is masked

    bytes_accessed = (x.size * x.dtype.itemsize
                      + w.size * w.dtype.itemsize
                      + b.size * b.dtype.itemsize
                      + M * N * jnp.dtype(out_dtype).itemsize)
    cost = pl.CostEstimate(flops=2 * M * K * N, transcendentals=0,
                           bytes_accessed=bytes_accessed)

    return pl.pallas_call(
        dense_relu_kernel,
        out_shape=jax.ShapeDtypeStruct((M, N), out_dtype),
        grid=(grid_m,),
        in_specs=[
            pl.BlockSpec((tm_eff, K), lambda i: (i, 0)),   # streamed x row-tile
            pl.BlockSpec((K, N), lambda i: (0, 0)),        # weight, VMEM-resident
            pl.BlockSpec((1, N), lambda i: (0, 0)),        # bias row, resident
        ],
        out_specs=pl.BlockSpec((tm_eff, N), lambda i: (i, 0)),
        compiler_params=pltpu.CompilerParams(
            dimension_semantics=("parallel",),             # megacore-shardable
        ),
        cost_estimate=cost,
    )(x, w, b)


def init_params(key):
    """Deterministic init mirroring nn.Linear defaults (uniform +/- 1/sqrt(fan_in)).

    Weight is stored (in, out) for x @ W; bias is pre-shaped (1, out) f32 once
    here so the per-call wrapper does no operand prep at all.
    """
    kw, kb = jax.random.split(key)
    bound = 1.0 / (IN_FEATURES ** 0.5)
    w = jax.random.uniform(kw, (IN_FEATURES, OUT_FEATURES), jnp.float32,
                           minval=-bound, maxval=bound)
    b = jax.random.uniform(kb, (1, OUT_FEATURES), jnp.float32,
                           minval=-bound, maxval=bound)
    return w, b


if __name__ == "__main__":
    key = jax.random.PRNGKey(0)
    k_x, k_p, k_x2 = jax.random.split(key, 3)
    w, b = init_params(k_p)

    # Small demo batch: single grid step (tile clamps to 16 rows), f32 output.
    batch = 16
    x = jax.random.normal(k_x, (batch, IN_FEATURES), jnp.float32)
    y = dense_relu(x, w, b)
    jax.block_until_ready(y)
    y_ref = jnp.maximum(x @ w + b, 0.0)
    assert y.shape == (batch, OUT_FEATURES)
    assert y.dtype == jnp.float32
    # bf16 matmul operands (f32 accumulate) -> loosened tolerance vs f32 ref.
    assert jnp.allclose(y, y_ref, atol=2e-2, rtol=2e-2), "mismatch (small batch)"

    # Ragged batch: exercises the 2-step parallel grid (tm_eff=512) and the
    # masked partial last block (no pad / slice), plus the bf16 output path.
    batch2 = 1000
    x2 = jax.random.normal(k_x2, (batch2, IN_FEATURES), jnp.float32)
    y2 = dense_relu(x2, w, b, out_dtype=jnp.bfloat16)
    jax.block_until_ready(y2)
    y2_ref = jnp.maximum(x2 @ w + b, 0.0)
    assert y2.shape == (batch2, OUT_FEATURES)
    assert y2.dtype == jnp.bfloat16
    assert jnp.allclose(y2.astype(jnp.float32), y2_ref, atol=2e-2, rtol=2e-2), \
        "mismatch (ragged batch)"

    print("KERNEL_OK")
</pallas_src>

<mosaic_0001>
module attributes {stable_mosaic.version = 11 : i64} {
  func.func @dense_relu_kernel(%arg0: i32, %arg1: memref<16x256xf32, #tpu.memory_space<vmem>>, %arg2: memref<256x256xf32, #tpu.memory_space<vmem>>, %arg3: memref<1x256xf32, #tpu.memory_space<vmem>>, %arg4: memref<16x256xf32, #tpu.memory_space<vmem>>) attributes {dimension_semantics = [#tpu.dimension_semantics<parallel>], iteration_bounds = array<i64: 1>, scalar_prefetch = 0 : i64, scratch_operands = 0 : i64, tpu.core_type = #tpu.core_type<tc>, window_params = [{transform_indices = @transform_0, window_bounds = array<i64: 16, 256>}, {pipeline_mode = #tpu.pipeline_mode<synchronous>, transform_indices = @transform_1, window_bounds = array<i64: 256, 256>}, {pipeline_mode = #tpu.pipeline_mode<synchronous>, transform_indices = @transform_2, window_bounds = array<i64: 1, 256>}, {transform_indices = @transform_3, window_bounds = array<i64: 16, 256>}]} {
    %c0 = arith.constant 0 : index
    %c0_0 = arith.constant 0 : index
    %0 = vector.load %arg1[%c0, %c0_0] : memref<16x256xf32, #tpu.memory_space<vmem>>, vector<16x256xf32>
    %1 = arith.truncf %0 : vector<16x256xf32> to vector<16x256xbf16>
    %c0_1 = arith.constant 0 : index
    %c0_2 = arith.constant 0 : index
    %2 = vector.load %arg2[%c0_1, %c0_2] : memref<256x256xf32, #tpu.memory_space<vmem>>, vector<256x256xf32>
    %3 = arith.truncf %2 : vector<256x256xf32> to vector<256x256xbf16>
    %cst = arith.constant dense<0.000000e+00> : vector<16x256xf32>
    %4 = tpu.matmul %1, %3, %cst {dimension_numbers = #tpu.dot_dimension_numbers<[1], [0], [0], [1], [0, 0, 1, 1], [], []>} : vector<16x256xbf16>, vector<256x256xbf16>, vector<16x256xf32> -> vector<16x256xf32>
    %c0_3 = arith.constant 0 : index
    %c0_4 = arith.constant 0 : index
    %5 = vector.load %arg3[%c0_3, %c0_4] : memref<1x256xf32, #tpu.memory_space<vmem>>, vector<1x256xf32>
    %6 = vector.broadcast %5 : vector<1x256xf32> to vector<16x256xf32>
    %7 = arith.addf %4, %6 : vector<16x256xf32>
    %cst_5 = arith.constant 0.000000e+00 : f32
    %8 = vector.broadcast %cst_5 : f32 to vector<16x256xf32>
    %9 = arith.maximumf %7, %8 : vector<16x256xf32>
    %c0_6 = arith.constant 0 : index
    %c0_7 = arith.constant 0 : index
    %10 = vector.load %arg4[%c0_6, %c0_7] : memref<16x256xf32, #tpu.memory_space<vmem>>, vector<16x256xf32>
    tpu.vector_store %arg4[%c0_6, %c0_7], %9 {strides = array<i32>} : memref<16x256xf32, #tpu.memory_space<vmem>>, vector<16x256xf32>,
    return
  }
  func.func @transform_0(%arg0: i32) -> (i32, i32) {
    %c0_i32 = arith.constant 0 : i32
    %c0_i32_0 = arith.constant 0 : i32
    return %arg0, %c0_i32 : i32, i32
  }
  func.func @transform_1(%arg0: i32) -> (i32, i32) {
    %c0_i32 = arith.constant 0 : i32
    %c0_i32_0 = arith.constant 0 : i32
    %c0_i32_1 = arith.constant 0 : i32
    return %c0_i32, %c0_i32_0 : i32, i32
  }
  func.func @transform_2(%arg0: i32) -> (i32, i32) {
    %c0_i32 = arith.constant 0 : i32
    %c0_i32_0 = arith.constant 0 : i32
    %c0_i32_1 = arith.constant 0 : i32
    return %c0_i32, %c0_i32_0 : i32, i32
  }
  func.func @transform_3(%arg0: i32) -> (i32, i32) {
    %c0_i32 = arith.constant 0 : i32
    %c0_i32_0 = arith.constant 0 : i32
    return %arg0, %c0_i32 : i32, i32
  }
}

</mosaic_0001>

<bundles_post_ra>
// kernel: tpu_custom_call.1
= control target key start
LH: loop header
LB: loop body
LE: loop exit
PB: predicated region body
PF: predicated region fallthrough
CT: control target
= control target key end

     0   :  { %8 = vsyncpa [#allocation3], 0  ;;  %s407_s0 = inlined_call_operand.hbm [shape: f32[16,256], index: 0, kind: input, shape index: {}]   ;;  %s408_s1 = inlined_call_operand.hbm [shape: f32[256,256], index: 1, kind: input, shape index: {}]   ;;  %s409_s2 = inlined_call_operand.hbm [shape: f32[1,256], index: 2, kind: input, shape index: {}]   ;;  %s410_s3 = inlined_call_operand.hbm [shape: f32[16,256], index: 3, kind: output, shape index: {}]  }
   0x1   :  { %9 = vsyncpa [#allocation6], 0 }
   0x2   :  { %10 = vsyncpa [#allocation4], 0  ;;  %s28_s14 = sshll.u32 %s408_s1, 4  ;;  %s360_s15 = smov [#allocation5]   ;;  %s29_s14 = int_to_ptr.hbm [resolvable:$true] %s28_s14 }
   0x3   :  { %s30_s16 = sshll.u32 %s360_s15, 4  ;;  %s15_s19 = sshll.u32 %s407_s0, 4  ;;  %s31_s16 = int_to_ptr.vmem [resolvable:$true] %s30_s16  ;;  %s16_s19 = int_to_ptr.hbm [resolvable:$true] %s15_s19 }
   0x4   :  { %s361_s20 = smov 256   ;;  %s362_s21 = smov 16  }
   0x5   :  { %36 = dma.hbm_to_vmem [thread:$0]  %s29_s14, 8192, %s31_s16, [#allocation6], %s361_s20, %s361_s20, %s362_s21  }
   0x6   :  { %s363_s22 = smov [#allocation2]   ;;  %s42_s1 = sshll.u32 %s409_s2, 4  ;;  %s43_s1 = int_to_ptr.hbm [resolvable:$true] %s42_s1 }
   0x7   :  { %s17_s23 = sshll.u32 %s363_s22, 4  ;;  %s364_s0 = smov [#allocation7]   ;;  %s18_s23 = int_to_ptr.vmem [resolvable:$true] %s17_s23 }
   0x8   :  { %23 = dma.hbm_to_vmem [thread:$0]  %s16_s19, 512, %s18_s23, [#allocation3], %s361_s20, %s361_s20, %s362_s21  }
   0x9   :  { %s44_s26 = sshll.u32 %s364_s0, 4  ;;  %s45_s26 = int_to_ptr.vmem [resolvable:$true] %s44_s26 }
   0xa   :  { %47 = dma.hbm_to_vmem [thread:$0]  %s43_s1, 32, %s45_s26, [#allocation6]  }
   0xb   :  { %354 = dma.done.wait [#allocation3], 512  }
   0xc   :  { %355 = vsyncadd [#allocation3], 4294966784 }
   0xd   :  { %356 = dma.done.wait [#allocation6], 8224  }
   0xe   :  { %357 = vsyncadd [#allocation6], 4294959072  ;;  %v94_v0 = vld [vmem:[#allocation5 + $0xe0] sm:$0xff]  ;;  %v96_v1 = vld [vmem:[#allocation5 + $0xf0] sm:$0xff]  ;;  %s365_s2 = smov [#allocation8]   ;;  %s238_s30 = sshll.u32 %s410_s3, 4  ;;  %s239_s30 = int_to_ptr.hbm [resolvable:$true] %s238_s30 }
   0xf   :  { %v126_v2 = vld [vmem:[#allocation5 + $0x1e0] sm:$0xff]  ;;  %v144_v3 = vpack.c.bf16 %v96_v1, %v94_v0  ;;  %v128_v4 = vld [vmem:[#allocation5 + $0x1f0] sm:$0xff]  ;;  %v95_v5 = vld [vmem:[#allocation5 + $0xe8] sm:$0xff]  ;;  %s236_s27 = sshll.u32 %s365_s2, 4  ;;  %s237_s27 = int_to_ptr.vmem [resolvable:$true] %s236_s27 }
  0x10   :  { %v97_v6 = vld [vmem:[#allocation5 + $0xf8] sm:$0xff]  ;;  %v160_v7 = vpack.c.bf16 %v128_v4, %v126_v2  ;;  %v127_v9 = vld [vmem:[#allocation5 + $0x1e8] sm:$0xff]  ;;  %v90_v11 = vld [vmem:[#allocation5 + $0xc0] sm:$0xff] }
  0x11   :  { %v145_v8 = vpack.c.bf16 %v97_v6, %v95_v5  ;;  %v129_v10 = vld [vmem:[#allocation5 + $0x1f8] sm:$0xff]  ;;  %168 = vmatpush.bf16.msra.mxu0 %v144_v3  ;;  %v92_v13 = vld [vmem:[#allocation5 + $0xd0] sm:$0xff]  ;;  %v122_v14 = vld [vmem:[#allocation5 + $0x1c0] sm:$0xff] }
  0x12   :  { %v161_v12 = vpack.c.bf16 %v129_v10, %v127_v9  ;;  %v124_v15 = vld [vmem:[#allocation5 + $0x1d0] sm:$0xff]  ;;  %182 = vmatpush.bf16.msra.mxu1 %v160_v7  ;;  %v142_v16 = vpack.c.bf16 %v92_v13, %v90_v11  ;;  %v91_v18 = vld [vmem:[#allocation5 + $0xc8] sm:$0xff]  ;;  %v93_v19 = vld [vmem:[#allocation5 + $0xd8] sm:$0xff] }
  0x13   :  { %196 = vmatpush.bf16.msra.mxu2 %v145_v8  ;;  %v158_v17 = vpack.c.bf16 %v124_v15, %v122_v14  ;;  %v123_v20 = vld [vmem:[#allocation5 + $0x1c8] sm:$0xff]  ;;  %v143_v21 = vpack.c.bf16 %v93_v19, %v91_v18  ;;  %v125_v22 = vld [vmem:[#allocation5 + $0x1d8] sm:$0xff]  ;;  %v86_v23 = vld [vmem:[#allocation5 + $0xa0] sm:$0xff] }
  0x14   :  { %210 = vmatpush.bf16.msra.mxu3 %v161_v12  ;;  %v88_v24 = vld [vmem:[#allocation5 + $0xb0] sm:$0xff]  ;;  %v159_v25 = vpack.c.bf16 %v125_v22, %v123_v20  ;;  %v118_v26 = vld [vmem:[#allocation5 + $0x1a0] sm:$0xff]  ;;  %v87_v28 = vld [vmem:[#allocation5 + $0xa8] sm:$0xff] }
  0x15   :  { %v120_v27 = vld [vmem:[#allocation5 + $0x1b0] sm:$0xff]  ;;  %169 = vmatpush.bf16.msra.mxu0 %v142_v16  ;;  %v140_v29 = vpack.c.bf16 %v88_v24, %v86_v23  ;;  %v89_v30 = vld [vmem:[#allocation5 + $0xb8] sm:$0xff]  ;;  %v119_v31 = vld [vmem:[#allocation5 + $0x1a8] sm:$0xff] }
  0x16   :  { %v121_v32 = vld [vmem:[#allocation5 + $0x1b8] sm:$0xff]  ;;  %183 = vmatpush.bf16.msra.mxu1 %v158_v17  ;;  %v156_v33 = vpack.c.bf16 %v120_v27, %v118_v26  ;;  %v141_v34 = vpack.c.bf16 %v89_v30, %v87_v28  ;;  %v82_v35 = vld [vmem:[#allocation5 + $0x80] sm:$0xff]  ;;  %v84_v36 = vld [vmem:[#allocation5 + $0x90] sm:$0xff] }
  0x17   :  { %197 = vmatpush.bf16.msra.mxu2 %v143_v21  ;;  %v114_v37 = vld [vmem:[#allocation5 + $0x180] sm:$0xff]  ;;  %v157_v38 = vpack.c.bf16 %v121_v32, %v119_v31  ;;  %v116_v39 = vld [vmem:[#allocation5 + $0x190] sm:$0xff]  ;;  %v83_v40 = vld [vmem:[#allocation5 + $0x88] sm:$0xff]  ;;  %v138_v44 = vpack.c.bf16 %v84_v36, %v82_v35 }
  0x18   :  { %211 = vmatpush.bf16.msra.mxu3 %v159_v25  ;;  %v85_v41 = vld [vmem:[#allocation5 + $0x98] sm:$0xff]  ;;  %v115_v42 = vld [vmem:[#allocation5 + $0x188] sm:$0xff]  ;;  %v154_v45 = vpack.c.bf16 %v116_v39, %v114_v37  ;;  %v78_v47 = vld [vmem:[#allocation5 + $0x60] sm:$0xff] }
  0x19   :  { %v117_v43 = vld [vmem:[#allocation5 + $0x198] sm:$0xff]  ;;  %170 = vmatpush.bf16.msra.mxu0 %v140_v29  ;;  %v139_v46 = vpack.c.bf16 %v85_v41, %v83_v40  ;;  %v80_v48 = vld [vmem:[#allocation5 + $0x70] sm:$0xff]  ;;  %v110_v49 = vld [vmem:[#allocation5 + $0x160] sm:$0xff] }
  0x1a   :  { %184 = vmatpush.bf16.msra.mxu1 %v156_v33  ;;  %v155_v50 = vpack.c.bf16 %v117_v43, %v115_v42  ;;  %v112_v51 = vld [vmem:[#allocation5 + $0x170] sm:$0xff]  ;;  %v79_v52 = vld [vmem:[#allocation5 + $0x68] sm:$0xff]  ;;  %v81_v53 = vld [vmem:[#allocation5 + $0x78] sm:$0xff]  ;;  %v136_v56 = vpack.c.bf16 %v80_v48, %v78_v47 }
  0x1b   :  { %198 = vmatpush.bf16.msra.mxu2 %v141_v34  ;;  %v111_v54 = vld [vmem:[#allocation5 + $0x168] sm:$0xff]  ;;  %v113_v55 = vld [vmem:[#allocation5 + $0x178] sm:$0xff]  ;;  %v152_v57 = vpack.c.bf16 %v112_v51, %v110_v49  ;;  %v137_v58 = vpack.c.bf16 %v81_v53, %v79_v52  ;;  %v74_v59 = vld [vmem:[#allocation5 + $0x40] sm:$0xff] }
  0x1c   :  { %212 = vmatpush.bf16.msra.mxu3 %v157_v38  ;;  %v76_v60 = vld [vmem:[#allocation5 + $0x50] sm:$0xff]  ;;  %v106_v61 = vld [vmem:[#allocation5 + $0x140] sm:$0xff]  ;;  %v153_v62 = vpack.c.bf16 %v113_v55, %v111_v54  ;;  %v75_v0 = vld [vmem:[#allocation5 + $0x48] sm:$0xff] }
  0x1d   :  { %171 = vmatpush.bf16.msra.mxu0 %v138_v44  ;;  %v108_v63 = vld [vmem:[#allocation5 + $0x150] sm:$0xff]  ;;  %v77_v1 = vld [vmem:[#allocation5 + $0x58] sm:$0xff]  ;;  %v107_v2 = vld [vmem:[#allocation5 + $0x148] sm:$0xff]  ;;  %v134_v4 = vpack.c.bf16 %v76_v60, %v74_v59 }
  0x1e   :  { %185 = vmatpush.bf16.msra.mxu1 %v154_v45  ;;  %v109_v3 = vld [vmem:[#allocation5 + $0x158] sm:$0xff]  ;;  %v150_v5 = vpack.c.bf16 %v108_v63, %v106_v61  ;;  %v135_v6 = vpack.c.bf16 %v77_v1, %v75_v0  ;;  %v70_v7 = vld [vmem:[#allocation5 + $0x20] sm:$0xff]  ;;  %v72_v8 = vld [vmem:[#allocation5 + $0x30] sm:$0xff] }
  0x1f   :  { %199 = vmatpush.bf16.msra.mxu2 %v139_v46  ;;  %v102_v9 = vld [vmem:[#allocation5 + $0x120] sm:$0xff]  ;;  %v151_v10 = vpack.c.bf16 %v109_v3, %v107_v2  ;;  %v104_v11 = vld [vmem:[#allocation5 + $0x130] sm:$0xff]  ;;  %v71_v12 = vld [vmem:[#allocation5 + $0x28] sm:$0xff]  ;;  %v132_v16 = vpack.c.bf16 %v72_v8, %v70_v7 }
  0x20   :  { %213 = vmatpush.bf16.msra.mxu3 %v155_v50  ;;  %v73_v13 = vld [vmem:[#allocation5 + $0x38] sm:$0xff]  ;;  %v103_v14 = vld [vmem:[#allocation5 + $0x128] sm:$0xff]  ;;  %v148_v17 = vpack.c.bf16 %v104_v11, %v102_v9  ;;  %v66_v19 = vld [vmem:[#allocation5] sm:$0xff] }
  0x21   :  { %172 = vmatpush.bf16.msra.mxu0 %v136_v56  ;;  %v105_v15 = vld [vmem:[#allocation5 + $0x138] sm:$0xff]  ;;  %v133_v18 = vpack.c.bf16 %v73_v13, %v71_v12  ;;  %v68_v20 = vld [vmem:[#allocation5 + $0x10] sm:$0xff]  ;;  %v98_v21 = vld [vmem:[#allocation5 + $0x100] sm:$0xff] }
  0x22   :  { %186 = vmatpush.bf16.msra.mxu1 %v152_v57  ;;  %v149_v22 = vpack.c.bf16 %v105_v15, %v103_v14  ;;  %v100_v23 = vld [vmem:[#allocation5 + $0x110] sm:$0xff]  ;;  %v67_v24 = vld [vmem:[#allocation5 + $0x8] sm:$0xff]  ;;  %v69_v25 = vld [vmem:[#allocation5 + $0x18] sm:$0xff]  ;;  %v130_v28 = vpack.c.bf16 %v68_v20, %v66_v19 }
  0x23   :  { %200 = vmatpush.bf16.msra.mxu2 %v137_v58  ;;  %v99_v26 = vld [vmem:[#allocation5 + $0x108] sm:$0xff]  ;;  %v101_v27 = vld [vmem:[#allocation5 + $0x118] sm:$0xff]  ;;  %v60_v29 = vld [vmem:[#allocation2] sm:$0xff]  ;;  %v146_v31 = vpack.c.bf16 %v100_v23, %v98_v21  ;;  %v131_v32 = vpack.c.bf16 %v69_v25, %v67_v24 }
  0x24   :  { %214 = vmatpush.bf16.msra.mxu3 %v153_v62  ;;  %v62_v30 = vld [vmem:[#allocation2 + $0x10] sm:$0xff]  ;;  %v61_v33 = vld [vmem:[#allocation2 + $0x8] sm:$0xff]  ;;  %v63_v34 = vld [vmem:[#allocation2 + $0x18] sm:$0xff]  ;;  %v147_v35 = vpack.c.bf16 %v101_v27, %v99_v26 }
  0x25   :  { %173 = vmatpush.bf16.msra.mxu0 %v134_v4  ;;  %v64_v36 = vpack.c.bf16 %v62_v30, %v60_v29  ;;  %v65_v37 = vpack.c.bf16 %v63_v34, %v61_v33  ;;  %v162_v38 = vld [vmem:[#allocation7] sm:$0x3] }
  0x26   :  { %187 = vmatpush.bf16.msra.mxu1 %v150_v5  ;;  %v164_v39 = vperm.slane %v162_v38, 0  ;;  %v165_v44 = vperm.slane %v162_v38, 1 }
  0x27   :  { %201 = vmatpush.bf16.msra.mxu2 %v135_v6 }
  0x28   :  { %215 = vmatpush.bf16.msra.mxu3 %v151_v10 }
  0x29   :  { %174 = vmatpush.bf16.msra.mxu0 %v132_v16 }
  0x2a   :  { %188 = vmatpush.bf16.msra.mxu1 %v148_v17 }
  0x2b   :  { %202 = vmatpush.bf16.msra.mxu2 %v133_v18 }
  0x2c   :  { %216 = vmatpush.bf16.msra.mxu3 %v149_v22 }
  0x2d   :  { %175 = vmatpush.bf16.msra.mxu0 %v130_v28 }
  0x2e   :  { %189 = vmatpush.bf16.msra.mxu1 %v146_v31 }
  0x2f   :  { %203 = vmatpush.bf16.msra.mxu2 %v131_v32 }
  0x30   :  { %217 = vmatpush.bf16.msra.mxu3 %v147_v35  ;;  %176 = vmatmul.bf16.vlgmr.msra.gmra.mxu0 %v64_v36 }
  0x31   :  { %190 = vmatmul.bf16.vlgmr.msra.gmra.mxu1 %v65_v37 }
  0x32   :  { %204 = vmatmul.bf16.vlgmr.msra.gmra.mxu2 %v64_v36 }
  0x33   :  { %218 = vmatmul.bf16.vlgmr.msra.gmra.mxu3 %v65_v37 }
  0xad   :  { %v177_v40 = vpop.f32.mrf.mxu0 }
  0xae   :  { %v178_v41 = vadd.f32 %v177_v40, %v164_v39  ;;  %v191_v42 = vpop.f32.mrf.mxu1 }
  0xb0   :  { %v192_v43 = vadd.f32 %v191_v42, %v178_v41 }
  0xb2   :  { %v224_v45 = vmax.f32 %v192_v43, 0.0 }
  0xb4   :  { %228 = vst [vmem:[#allocation8] sm:$0xff] %v224_v45 }
  0xb5   :  { %v205_v46 = vpop.f32.mrf.mxu2  ;;  %v179_v49 = vpop.f32.mrf.mxu0 }
  0xb6   :  { %v206_v47 = vadd.f32 %v205_v46, %v165_v44  ;;  %v219_v48 = vpop.f32.mrf.mxu3  ;;  %v180_v50 = vadd.f32 %v179_v49, %v164_v39  ;;  %v193_v52 = vpop.f32.mrf.mxu1 }
  0xb8   :  { %v220_v51 = vadd.f32 %v219_v48, %v206_v47  ;;  %v194_v53 = vadd.f32 %v193_v52, %v180_v50 }
  0xba   :  { %v225_v54 = vmax.f32 %v220_v51, 0.0  ;;  %v226_v55 = vmax.f32 %v194_v53, 0.0 }
  0xbc   :  { %229 = vst [vmem:[#allocation8 + $0x8] sm:$0xff] %v225_v54 }
  0xbd   :  { %230 = vst [vmem:[#allocation8 + $0x10] sm:$0xff] %v226_v55  ;;  %v207_v56 = vpop.f32.mrf.mxu2 }
  0xbe   :  { %v208_v57 = vadd.f32 %v207_v56, %v165_v44  ;;  %v221_v58 = vpop.f32.mrf.mxu3 }
  0xc0   :  { %v222_v59 = vadd.f32 %v221_v58, %v208_v57 }
  0xc2   :  { %v227_v60 = vmax.f32 %v222_v59, 0.0 }
  0xc4   :  { %231 = vst [vmem:[#allocation8 + $0x18] sm:$0xff] %v227_v60 }
  0xc5   :  { %244 = dma.vmem_to_hbm [thread:$0]  %s237_s27, 512, %s239_s30, [#allocation4], %s361_s20, %s361_s20, %s362_s21  }
  0xc6   :  { %358 = dma.done.wait [#allocation4], 512  }
  0xc7   :  { %359 = vsyncadd [#allocation4], 4294966784 }
  0xc8   :  { %249 = vsyncpa [#allocation3], 1 }
  0xc9   :  { %250 = vsyncpa [#allocation6], 1 }
  0xca   :  { %251 = vsyncpa [#allocation4], 1 }

</bundles_post_ra>
